<compile_context>
chip_gen: v7x
topology: tpu7x:2x2x1
jax: 0.10.0
libtpu: 0.0.40
codegen_flags: <defaults>
</compile_context>

<pallas_src>
import functools
import math

import jax
import jax.numpy as jnp
import numpy as np
from jax import lax
from jax.experimental import pallas as pl
from jax.experimental.pallas import tpu as pltpu

TARGET_BLOCK_BYTES = 2 * 1024 * 1024  # ~2 MiB (VMEM footprint) per input block


def _cdiv(a, b):
    return -(-a // b)


def _round_up(x, m):
    return _cdiv(x, m) * m


def _plan_2d(shape):
    """Pick a copy-free 2-D view (M, L) of a contiguous tensor.

    L is a product of trailing dims (so the reshape is a pure collapse of
    adjacent dims -> layout preserving / bitcast), chosen to maximize vreg
    (sublane x lane) utilization for the VPU/EUP work.
    """
    n = int(np.prod(shape))
    best_L, best_score = None, -1.0
    L = 1
    for d in reversed(shape):
        L *= int(d)
        M = n // L
        lane_eff = L / (128.0 * _cdiv(L, 128))
        sub_eff = (M / 8.0) if M < 8 else M / (8.0 * _cdiv(M, 8))
        score = lane_eff * sub_eff
        if best_L is None or score > best_score:
            best_L, best_score = L, score
    return n // best_L, best_L


def _plan_tile_rows(M, L, itemsize):
    """Rows per block: ~TARGET_BLOCK_BYTES of VMEM footprint, multiple of 8."""
    row_bytes = _round_up(L, 128) * itemsize  # padded VMEM footprint per row
    r = max(TARGET_BLOCK_BYTES // row_bytes, 8)
    r = _round_up(r, 8)
    if r >= M:
        r = M  # single block covering the whole (small) array: always legal
    return r


# ----------------------------------------------------------------------------
# Kernels: partial sums accumulate into a resident (1, L) f32 output block.
# The ragged tail block (grid * tile_rows > M) is masked with a static count.
# ----------------------------------------------------------------------------
def _make_sq_diff_kernel(valid_rows, tile_rows, needs_mask):
    def kernel(x_ref, t_ref, acc_ref):
        @pl.when(pl.program_id(0) == 0)
        def _():
            acc_ref[...] = jnp.zeros_like(acc_ref)

        x = x_ref[...].astype(jnp.float32)
        t = t_ref[...].astype(jnp.float32)
        diff = x - t
        if needs_mask:
            rows = (pl.program_id(0) * tile_rows
                    + lax.broadcasted_iota(jnp.int32, diff.shape, 0))
            diff = jnp.where(rows < valid_rows, diff, 0.0)
        acc_ref[...] += jnp.sum(diff * diff, axis=0, keepdims=True)

    return kernel


def _make_log_kernel(valid_rows, tile_rows, needs_mask):
    def kernel(x_ref, acc_ref):
        @pl.when(pl.program_id(0) == 0)
        def _():
            acc_ref[...] = jnp.zeros_like(acc_ref)

        lg = jnp.log(x_ref[...].astype(jnp.float32))
        if needs_mask:
            rows = (pl.program_id(0) * tile_rows
                    + lax.broadcasted_iota(jnp.int32, lg.shape, 0))
            lg = jnp.where(rows < valid_rows, lg, 0.0)
        acc_ref[...] += jnp.sum(lg, axis=0, keepdims=True)

    return kernel


def _reduce_call(kernel, inputs, M, L, tile_rows, *, flops, transcendentals):
    grid = (_cdiv(M, tile_rows),)
    bytes_accessed = sum(M * L * x.dtype.itemsize for x in inputs) + L * 4
    partial = pl.pallas_call(
        kernel,
        grid=grid,
        in_specs=[pl.BlockSpec((tile_rows, L), lambda i: (i, 0)) for _ in inputs],
        # Resident accumulator across the whole (arbitrary) reduction axis.
        out_specs=pl.BlockSpec((1, L), lambda i: (0, 0)),
        out_shape=jax.ShapeDtypeStruct((1, L), jnp.float32),
        compiler_params=pltpu.CompilerParams(
            dimension_semantics=("arbitrary",)),
        cost_estimate=pl.CostEstimate(
            flops=int(flops),
            transcendentals=int(transcendentals),
            bytes_accessed=int(bytes_accessed)),
    )(*inputs)
    # Tiny final cross-lane reduce of the (1, L) partials happens in XLA.
    return jnp.sum(partial)


# ----------------------------------------------------------------------------
# Wrappers (copy-free reshapes only; masking handles the ragged tail).
# ----------------------------------------------------------------------------
def mse_loss_pallas(x_hat, target):
    assert x_hat.shape == target.shape
    numel = int(np.prod(target.shape))
    M, L = _plan_2d(target.shape)
    itemsize = max(jnp.dtype(x_hat.dtype).itemsize, jnp.dtype(target.dtype).itemsize)
    tile_rows = _plan_tile_rows(M, L, itemsize)
    needs_mask = (M % tile_rows) != 0
    kernel = _make_sq_diff_kernel(M, tile_rows, needs_mask)
    total = _reduce_call(
        kernel,
        (jnp.reshape(x_hat, (M, L)), jnp.reshape(target, (M, L))),
        M, L, tile_rows,
        flops=3 * numel, transcendentals=0)
    return total / numel


def log_sum_pallas(x):
    numel = int(np.prod(x.shape))
    M, L = _plan_2d(x.shape)
    tile_rows = _plan_tile_rows(M, L, jnp.dtype(x.dtype).itemsize)
    needs_mask = (M % tile_rows) != 0
    kernel = _make_log_kernel(M, tile_rows, needs_mask)
    return _reduce_call(
        kernel, (jnp.reshape(x, (M, L)),), M, L, tile_rows,
        flops=numel, transcendentals=numel)


def _forward_impl(output, target, lmbda):
    N, _, H, W = target.shape
    num_pixels = N * H * W
    out = {}
    # One pallas_call per likelihood tensor (no concat copy); sum scalars in XLA.
    total_log = jnp.float32(0.0)
    for lk in output["likelihoods"].values():
        total_log = total_log + log_sum_pallas(lk)
    out["bpp_loss"] = total_log / (-math.log(2) * num_pixels)
    out["mse_loss"] = mse_loss_pallas(output["x_hat"], target)
    out["loss"] = lmbda * 255 ** 2 * out["mse_loss"] + out["bpp_loss"]
    return out


_rate_distortion_forward = jax.jit(_forward_impl, static_argnames=("lmbda",))


class RateDistortionLoss:
    """Pallas/TPU port of the PyTorch RateDistortionLoss forward pass."""

    # nn.MSELoss() is just mean-squared-error reduction -> fused into the
    # Pallas sum kernel; no separate module state needed.
    def __init__(self, lmbda=0.01):
        self.lmbda = float(lmbda)

    def __call__(self, output, target):
        # jit so the (M, L) collapsing reshapes stay bitcasts (no HBM copies).
        return _rate_distortion_forward(output, target, lmbda=self.lmbda)


# ----------------------------------------------------------------------------
# Pure-JAX reference for correctness checking.
# ----------------------------------------------------------------------------
def reference(output, target, lmbda):
    N, _, H, W = target.shape
    num_pixels = N * H * W
    bpp = sum(
        jnp.sum(jnp.log(l)) / (-math.log(2) * num_pixels)
        for l in output["likelihoods"].values()
    )
    mse = jnp.mean(jnp.square(output["x_hat"] - target))
    return {"bpp_loss": bpp, "mse_loss": mse,
            "loss": lmbda * 255 ** 2 * mse + bpp}


if __name__ == "__main__":
    key = jax.random.PRNGKey(0)
    k1, k2, k3, k4 = jax.random.split(key, 4)

    N, C, H, W = 2, 4, 16, 16
    target = jax.random.uniform(k1, (N, C, H, W), jnp.float32)
    x_hat = target + 0.5 * jax.random.normal(k2, (N, C, H, W), jnp.float32)
    likelihoods = {
        "y": jax.random.uniform(k3, (N, 8, 4, 4), jnp.float32, minval=1e-3, maxval=1.0),
        "z": jax.random.uniform(k4, (N, 8, 2, 2), jnp.float32, minval=1e-3, maxval=1.0),
    }
    output = {"x_hat": x_hat, "likelihoods": likelihoods}

    loss_fn = RateDistortionLoss(lmbda=0.01)
    out = loss_fn(output, target)
    jax.block_until_ready(out)

    ref = reference(output, target, 0.01)
    for k in ("bpp_loss", "mse_loss", "loss"):
        np.testing.assert_allclose(
            np.asarray(out[k]), np.asarray(ref[k]), rtol=1e-5, atol=1e-5
        )

    print("KERNEL_OK")
</pallas_src>

<mosaic_0001>
module attributes {stable_mosaic.version = 11 : i64} {
  func.func @kernel(%arg0: i32, %arg1: memref<2x128xf32, #tpu.memory_space<vmem>>, %arg2: memref<1x128xf32, #tpu.memory_space<vmem>>) attributes {dimension_semantics = [#tpu.dimension_semantics<arbitrary>], iteration_bounds = array<i64: 1>, scalar_prefetch = 0 : i64, scratch_operands = 0 : i64, tpu.core_type = #tpu.core_type<tc>, window_params = [{transform_indices = @transform_0, window_bounds = array<i64: 2, 128>}, {pipeline_mode = #tpu.pipeline_mode<synchronous>, transform_indices = @transform_1, window_bounds = array<i64: 1, 128>}]} {
    %c0_i32 = arith.constant 0 : i32
    %0 = arith.cmpi eq, %arg0, %c0_i32 : i32
    %1 = arith.extui %0 : i1 to i32
    %c0_i32_0 = arith.constant 0 : i32
    %2 = arith.cmpi ne, %1, %c0_i32_0 : i32
    scf.if %2 {
      %cst_6 = arith.constant 0.000000e+00 : f32
      %10 = vector.broadcast %cst_6 : f32 to vector<1x128xf32>
      %c0_7 = arith.constant 0 : index
      %c0_8 = arith.constant 0 : index
      %11 = vector.load %arg2[%c0_7, %c0_8] : memref<1x128xf32, #tpu.memory_space<vmem>>, vector<1x128xf32>
      tpu.vector_store %arg2[%c0_7, %c0_8], %10 {strides = array<i32>} : memref<1x128xf32, #tpu.memory_space<vmem>>, vector<1x128xf32>,
    } else {
    }
    %c0 = arith.constant 0 : index
    %c0_1 = arith.constant 0 : index
    %3 = vector.load %arg1[%c0, %c0_1] : memref<2x128xf32, #tpu.memory_space<vmem>>, vector<2x128xf32>
    %4 = math.log %3 : vector<2x128xf32>
    %c0_2 = arith.constant 0 : index
    %c0_3 = arith.constant 0 : index
    %5 = vector.load %arg2[%c0_2, %c0_3] : memref<1x128xf32, #tpu.memory_space<vmem>>, vector<1x128xf32>
    %cst = arith.constant dense<0.000000e+00> : vector<128xf32>
    %6 = vector.multi_reduction <add>, %4, %cst [0] : vector<2x128xf32> to vector<128xf32>
    %7 = vector.shape_cast %6 : vector<128xf32> to vector<1x128xf32>
    %8 = arith.addf %5, %7 : vector<1x128xf32>
    %c0_4 = arith.constant 0 : index
    %c0_5 = arith.constant 0 : index
    %9 = vector.load %arg2[%c0_4, %c0_5] : memref<1x128xf32, #tpu.memory_space<vmem>>, vector<1x128xf32>
    tpu.vector_store %arg2[%c0_4, %c0_5], %8 {strides = array<i32>} : memref<1x128xf32, #tpu.memory_space<vmem>>, vector<1x128xf32>,
    return
  }
  func.func @transform_0(%arg0: i32) -> (i32, i32) {
    %c0_i32 = arith.constant 0 : i32
    %c0_i32_0 = arith.constant 0 : i32
    return %arg0, %c0_i32 : i32, i32
  }
  func.func @transform_1(%arg0: i32) -> (i32, i32) {
    %c0_i32 = arith.constant 0 : i32
    %c0_i32_0 = arith.constant 0 : i32
    %c0_i32_1 = arith.constant 0 : i32
    return %c0_i32, %c0_i32_0 : i32, i32
  }
}

module attributes {stable_mosaic.version = 11 : i64} {
  func.func @kernel(%arg0: i32, %arg1: memref<2x32xf32, #tpu.memory_space<vmem>>, %arg2: memref<1x32xf32, #tpu.memory_space<vmem>>) attributes {dimension_semantics = [#tpu.dimension_semantics<arbitrary>], iteration_bounds = array<i64: 1>, scalar_prefetch = 0 : i64, scratch_operands = 0 : i64, tpu.core_type = #tpu.core_type<tc>, window_params = [{transform_indices = @transform_0, window_bounds = array<i64: 2, 32>}, {pipeline_mode = #tpu.pipeline_mode<synchronous>, transform_indices = @transform_1, window_bounds = array<i64: 1, 32>}]} {
    %c0_i32 = arith.constant 0 : i32
    %0 = arith.cmpi eq, %arg0, %c0_i32 : i32
    %1 = arith.extui %0 : i1 to i32
    %c0_i32_0 = arith.constant 0 : i32
    %2 = arith.cmpi ne, %1, %c0_i32_0 : i32
    scf.if %2 {
      %cst_6 = arith.constant 0.000000e+00 : f32
      %10 = vector.broadcast %cst_6 : f32 to vector<1x32xf32>
      %c0_7 = arith.constant 0 : index
      %c0_8 = arith.constant 0 : index
      %11 = vector.load %arg2[%c0_7, %c0_8] : memref<1x32xf32, #tpu.memory_space<vmem>>, vector<1x32xf32>
      tpu.vector_store %arg2[%c0_7, %c0_8], %10 {strides = array<i32>} : memref<1x32xf32, #tpu.memory_space<vmem>>, vector<1x32xf32>,
    } else {
    }
    %c0 = arith.constant 0 : index
    %c0_1 = arith.constant 0 : index
    %3 = vector.load %arg1[%c0, %c0_1] : memref<2x32xf32, #tpu.memory_space<vmem>>, vector<2x32xf32>
    %4 = math.log %3 : vector<2x32xf32>
    %c0_2 = arith.constant 0 : index
    %c0_3 = arith.constant 0 : index
    %5 = vector.load %arg2[%c0_2, %c0_3] : memref<1x32xf32, #tpu.memory_space<vmem>>, vector<1x32xf32>
    %cst = arith.constant dense<0.000000e+00> : vector<32xf32>
    %6 = vector.multi_reduction <add>, %4, %cst [0] : vector<2x32xf32> to vector<32xf32>
    %7 = vector.shape_cast %6 : vector<32xf32> to vector<1x32xf32>
    %8 = arith.addf %5, %7 : vector<1x32xf32>
    %c0_4 = arith.constant 0 : index
    %c0_5 = arith.constant 0 : index
    %9 = vector.load %arg2[%c0_4, %c0_5] : memref<1x32xf32, #tpu.memory_space<vmem>>, vector<1x32xf32>
    tpu.vector_store %arg2[%c0_4, %c0_5], %8 {strides = array<i32>} : memref<1x32xf32, #tpu.memory_space<vmem>>, vector<1x32xf32>,
    return
  }
  func.func @transform_0(%arg0: i32) -> (i32, i32) {
    %c0_i32 = arith.constant 0 : i32
    %c0_i32_0 = arith.constant 0 : i32
    return %arg0, %c0_i32 : i32, i32
  }
  func.func @transform_1(%arg0: i32) -> (i32, i32) {
    %c0_i32 = arith.constant 0 : i32
    %c0_i32_0 = arith.constant 0 : i32
    %c0_i32_1 = arith.constant 0 : i32
    return %c0_i32, %c0_i32_0 : i32, i32
  }
}

module attributes {stable_mosaic.version = 11 : i64} {
  func.func @kernel(%arg0: i32, %arg1: memref<8x256xf32, #tpu.memory_space<vmem>>, %arg2: memref<8x256xf32, #tpu.memory_space<vmem>>, %arg3: memref<1x256xf32, #tpu.memory_space<vmem>>) attributes {dimension_semantics = [#tpu.dimension_semantics<arbitrary>], iteration_bounds = array<i64: 1>, scalar_prefetch = 0 : i64, scratch_operands = 0 : i64, tpu.core_type = #tpu.core_type<tc>, window_params = [{transform_indices = @transform_0, window_bounds = array<i64: 8, 256>}, {transform_indices = @transform_1, window_bounds = array<i64: 8, 256>}, {pipeline_mode = #tpu.pipeline_mode<synchronous>, transform_indices = @transform_2, window_bounds = array<i64: 1, 256>}]} {
    %c0_i32 = arith.constant 0 : i32
    %0 = arith.cmpi eq, %arg0, %c0_i32 : i32
    %1 = arith.extui %0 : i1 to i32
    %c0_i32_0 = arith.constant 0 : i32
    %2 = arith.cmpi ne, %1, %c0_i32_0 : i32
    scf.if %2 {
      %cst_8 = arith.constant 0.000000e+00 : f32
      %12 = vector.broadcast %cst_8 : f32 to vector<1x256xf32>
      %c0_9 = arith.constant 0 : index
      %c0_10 = arith.constant 0 : index
      %13 = vector.load %arg3[%c0_9, %c0_10] : memref<1x256xf32, #tpu.memory_space<vmem>>, vector<1x256xf32>
      tpu.vector_store %arg3[%c0_9, %c0_10], %12 {strides = array<i32>} : memref<1x256xf32, #tpu.memory_space<vmem>>, vector<1x256xf32>,
    } else {
    }
    %c0 = arith.constant 0 : index
    %c0_1 = arith.constant 0 : index
    %3 = vector.load %arg1[%c0, %c0_1] : memref<8x256xf32, #tpu.memory_space<vmem>>, vector<8x256xf32>
    %c0_2 = arith.constant 0 : index
    %c0_3 = arith.constant 0 : index
    %4 = vector.load %arg2[%c0_2, %c0_3] : memref<8x256xf32, #tpu.memory_space<vmem>>, vector<8x256xf32>
    %5 = arith.subf %3, %4 : vector<8x256xf32>
    %c0_4 = arith.constant 0 : index
    %c0_5 = arith.constant 0 : index
    %6 = vector.load %arg3[%c0_4, %c0_5] : memref<1x256xf32, #tpu.memory_space<vmem>>, vector<1x256xf32>
    %7 = arith.mulf %5, %5 : vector<8x256xf32>
    %cst = arith.constant dense<0.000000e+00> : vector<256xf32>
    %8 = vector.multi_reduction <add>, %7, %cst [0] : vector<8x256xf32> to vector<256xf32>
    %9 = vector.shape_cast %8 : vector<256xf32> to vector<1x256xf32>
    %10 = arith.addf %6, %9 : vector<1x256xf32>
    %c0_6 = arith.constant 0 : index
    %c0_7 = arith.constant 0 : index
    %11 = vector.load %arg3[%c0_6, %c0_7] : memref<1x256xf32, #tpu.memory_space<vmem>>, vector<1x256xf32>
    tpu.vector_store %arg3[%c0_6, %c0_7], %10 {strides = array<i32>} : memref<1x256xf32, #tpu.memory_space<vmem>>, vector<1x256xf32>,
    return
  }
  func.func @transform_0(%arg0: i32) -> (i32, i32) {
    %c0_i32 = arith.constant 0 : i32
    %c0_i32_0 = arith.constant 0 : i32
    return %arg0, %c0_i32 : i32, i32
  }
  func.func @transform_1(%arg0: i32) -> (i32, i32) {
    %c0_i32 = arith.constant 0 : i32
    %c0_i32_0 = arith.constant 0 : i32
    return %arg0, %c0_i32 : i32, i32
  }
  func.func @transform_2(%arg0: i32) -> (i32, i32) {
    %c0_i32 = arith.constant 0 : i32
    %c0_i32_0 = arith.constant 0 : i32
    %c0_i32_1 = arith.constant 0 : i32
    return %c0_i32, %c0_i32_0 : i32, i32
  }
}

</mosaic_0001>

<bundles_post_ra>
// kernel: _forward_impl.3
= control target key start
LH: loop header
LB: loop body
LE: loop exit
PB: predicated region body
PF: predicated region fallthrough
CT: control target
= control target key end

     0   :  { %v34_v0 = vmov 0.0   ;;  %vm17_vm0 = vcmask 1041408   ;;  %s57_s1 = inlined_call_operand.vmem [shape: f32[1,128], index: 1, kind: output, shape index: {}]   ;;  %s58_s0 = inlined_call_operand.vmem [shape: f32[2,128], index: 0, kind: input, shape index: {}]  }
   0x1   :  { %12 = vst [vmem:[%s57_s1] sm:$0x1] %v34_v0  ;;  %v13_v1 = vld [vmem:[%s58_s0] sm:$0x3] }
   0x2   :  { %32 = vlog2.f32 %v13_v1 }
   0x8   :  { %v16_v10 = vld [vmem:[%s57_s1] sm:$0x1] }
   0xc   :  { %v33_v2 = vpop.eup %32 }
   0xd   :  { %v15_v3 = vmul.f32 0.6931472, %v33_v2 }
   0xf   :  { %v18_v4 = vsel %vm17_vm0, %v15_v3, 0.0 }
  0x10   :  { %v19_v5 = vrot.slane %v18_v4, 4 }
  0x12   :  { %v20_v6 = vadd.f32 %v19_v5, %v18_v4 }
  0x14   :  { %v21_v7 = vrot.slane %v20_v6, 2 }
  0x16   :  { %v22_v8 = vadd.f32 %v21_v7, %v20_v6 }
  0x18   :  { %v23_v9 = vrot.slane %v22_v8, 1 }
  0x1a   :  { %v24_v11 = vadd.f32 %v23_v9, %v22_v8 }
  0x1c   :  { %v25_v12 = vadd.f32 %v24_v11, %v16_v10 }
  0x1e   :  { %26 = vst [vmem:[%s57_s1] sm:$0x1] %v25_v12 }

// kernel: _forward_impl.4
= control target key start
LH: loop header
LB: loop body
LE: loop exit
PB: predicated region body
PF: predicated region fallthrough
CT: control target
= control target key end

     0   :  { %vm12_vm0 = vcmask 253952   ;;  %v36_v0 = vmov 0.0   ;;  %vm18_vm1 = vcmask 254976   ;;  %s61_s0 = inlined_call_operand.vmem [shape: f32[2,32], index: 0, kind: input, shape index: {}]   ;;  %s62_s1 = inlined_call_operand.vmem [shape: f32[1,32], index: 1, kind: output, shape index: {}]  }
   0x1   :  { %13 = vst.msk [vmem:[%s62_s1] sm:$0x1] %vm12_vm0, %v36_v0  ;;  %v14_v1 = vld [vmem:[%s61_s0] sm:$0x3] }
   0x2   :  { %34 = vlog2.f32 %v14_v1 }
   0x8   :  { %v17_v10 = vld [vmem:[%s62_s1] sm:$0x1] }
   0xc   :  { %v35_v2 = vpop.eup %34 }
   0xd   :  { %v16_v3 = vmul.f32 0.6931472, %v35_v2 }
   0xf   :  { %v19_v4 = vsel %vm18_vm1, %v16_v3, 0.0 }
  0x10   :  { %v20_v5 = vrot.slane %v19_v4, 4 }
  0x12   :  { %v21_v6 = vadd.f32 %v20_v5, %v19_v4 }
  0x14   :  { %v22_v7 = vrot.slane %v21_v6, 2 }
  0x16   :  { %v23_v8 = vadd.f32 %v22_v7, %v21_v6 }
  0x18   :  { %v24_v9 = vrot.slane %v23_v8, 1 }
  0x1a   :  { %v25_v11 = vadd.f32 %v24_v9, %v23_v8 }
  0x1c   :  { %v26_v12 = vadd.f32 %v25_v11, %v17_v10 }
  0x1e   :  { %28 = vst.msk [vmem:[%s62_s1] sm:$0x1] %vm12_vm0, %v26_v12 }

// kernel: _forward_impl.5
= control target key start
LH: loop header
LB: loop body
LE: loop exit
PB: predicated region body
PF: predicated region fallthrough
CT: control target
= control target key end

     0   :  { %v15_v0 = vlaneseq  ;;  %v71_v7 = vmov 0.0   ;;  %v72_v15 = vmov 1966171168   ;;  %s117_s0 = inlined_call_operand.vmem [shape: f32[8,256], index: 0, kind: input, shape index: {}]   ;;  %s118_s1 = inlined_call_operand.vmem [shape: f32[8,256], index: 1, kind: input, shape index: {}]   ;;  %s119_s2 = inlined_call_operand.vmem [shape: f32[1,256], index: 2, kind: output, shape index: {}]  }
   0x1   :  { %v20_v1 = vld [vmem:[%s117_s0] sm:$0xff]  ;;  %v21_v2 = vld [vmem:[%s117_s0 + $0x8] sm:$0xff]  ;;  %v45_v16 = vunpack.c.l.s4 %v72_v15 }
   0x2   :  { %v22_v3 = vld [vmem:[%s118_s1] sm:$0xff]  ;;  %vm97_vm0 = vcmp.lt.s32.totalorder %v15_v0, 256  ;;  %v23_v5 = vld [vmem:[%s118_s1 + $0x8] sm:$0xff]  ;;  %v48_v22 = vshrl.u32 %v15_v0, 7 }
   0x3   :  { %v24_v6 = vsub.f32 %v20_v1, %v22_v3  ;;  %19 = vst.msk [vmem:[%s119_s2] sm:$0x3] %vm97_vm0, %v71_v7  ;;  %v25_v8 = vsub.f32 %v21_v2, %v23_v5  ;;  %v46_v21 = vunpack.c.0.s8 %v45_v16 }
   0x5   :  { %v27_v9 = vmul.f32 %v24_v6, %v24_v6  ;;  %v28_v10 = vmul.f32 %v25_v8, %v25_v8  ;;  %v49_v27 = vsub.s32 %v46_v21, %v48_v22 }
   0x7   :  { %v29_v11 = vrot.slane %v27_v9, 4  ;;  %v35_v12 = vrot.slane %v28_v10, 4 }
   0x9   :  { %v30_v13 = vadd.f32 %v29_v11, %v27_v9  ;;  %v36_v14 = vadd.f32 %v35_v12, %v28_v10 }
   0xa   :  { %v26_v30 = vld [vmem:[%s119_s2] sm:$0x3] }
   0xb   :  { %v31_v17 = vrot.slane %v30_v13, 2  ;;  %v37_v18 = vrot.slane %v36_v14, 2 }
   0xd   :  { %v32_v19 = vadd.f32 %v31_v17, %v30_v13  ;;  %v38_v20 = vadd.f32 %v37_v18, %v36_v14 }
   0xf   :  { %v33_v23 = vrot.slane %v32_v19, 1  ;;  %v39_v24 = vrot.slane %v38_v20, 1 }
  0x11   :  { %v34_v25 = vadd.f32 %v33_v23, %v32_v19  ;;  %v40_v26 = vadd.f32 %v39_v24, %v38_v20 }
  0x13   :  { %v43_v28 = vcombine.low %v34_v25, %v40_v26 }
  0x15   :  { %v50_v29 = vrot.slane %v43_v28, %v49_v27 }
  0x17   :  { %v57_v31 = vrot.slane %v50_v29, %v49_v27 }
  0x19   :  { %v59_v32 = vadd.f32 %v57_v31, %v26_v30 }
  0x1b   :  { %64 = vst.msk [vmem:[%s119_s2] sm:$0x3] %vm97_vm0, %v59_v32 }

</bundles_post_ra>
